<compile_context>
chip_gen: v6e
topology: v6e:2x2x1
jax: 0.10.0
libtpu: 0.0.40
codegen_flags: <defaults>
</compile_context>

<pallas_src>
import numpy as np

import jax
import jax.numpy as jnp
from jax.experimental import pallas as pl
from jax.experimental.pallas import tpu as pltpu


def _round_up(x, m):
    return ((x + m - 1) // m) * m


def _sgcn_bsr_kernel(kidx_ref, cnt_ref, adj_ref, feat_ref, out_ref, acc_ref):
    # grid = (row_blocks, col_blocks, max_nnz_kblocks); reduction axis last.
    del kidx_ref  # only used by the index_maps
    i = pl.program_id(0)
    k = pl.program_id(2)

    @pl.when(k == 0)
    def _():
        acc_ref[...] = jnp.zeros_like(acc_ref)

    # Only accumulate real (nonzero) adj blocks; padded tail steps are skipped.
    @pl.when(k < cnt_ref[i])
    def _():
        acc_ref[...] += jnp.dot(
            adj_ref[...], feat_ref[...], preferred_element_type=jnp.float32
        )

    @pl.when(k == pl.num_programs(2) - 1)
    def _():
        out_ref[...] = acc_ref[...].astype(out_ref.dtype)


def sgcn_conv(adj, feat, *, tm=256, tn=256, tk=512):
    """out = adj @ feat  (SgcnConv.forward).

    Must be called eagerly (not under jit): the block-sparsity metadata is
    derived on host from the concrete adj values.
    """
    N, K = adj.shape
    K2, D = feat.shape
    assert K == K2, "adj columns must match feat rows"
    out_dtype = feat.dtype

    # ---- tile sizes: clamp to the (padded) problem, keep TPU layout-legal ----
    tm = min(tm, _round_up(N, 16))    # sublane dim of adj/out (x16 for bf16)
    tk = min(tk, _round_up(K, 128))   # lane dim of adj / sublane dim of feat
    tn = min(tn, _round_up(D, 128))   # lane dim of feat / out
    # Feed both TensorCores on v7x: aim for >= 2 row blocks when N allows.
    if N > 16 and _round_up(N, tm) // tm < 2:
        tm = _round_up(-(-N // 2), 16)

    Np, Kp, Dp = _round_up(N, tm), _round_up(K, tk), _round_up(D, tn)
    n_i, n_j, n_k = Np // tm, Dp // tn, Kp // tk

    # ---- bf16 operands (f32 accumulation inside the kernel) ----
    adj_b = jnp.pad(adj.astype(jnp.bfloat16), ((0, Np - N), (0, Kp - K)))
    feat_b = jnp.pad(feat.astype(jnp.bfloat16), ((0, Kp - K), (0, Dp - D)))

    # ---- block-CSR metadata over (tm x tk) adj tiles (host side, static) ----
    adj_np = np.zeros((Np, Kp), np.float32)
    adj_np[:N, :K] = np.asarray(adj, dtype=np.float32)
    blk_nz = adj_np.reshape(n_i, tm, n_k, tk).any(axis=(1, 3))      # (n_i, n_k)
    cnt_np = blk_nz.sum(axis=1).astype(np.int32)                    # (n_i,)
    max_nnz = max(int(cnt_np.max()) if cnt_np.size else 0, 1)
    kidx_np = np.zeros((n_i, max_nnz), np.int32)
    for r in range(n_i):
        nz = np.nonzero(blk_nz[r])[0].astype(np.int32)
        c = nz.size
        kidx_np[r, :c] = nz
        kidx_np[r, c:] = nz[-1] if c > 0 else 0   # repeat last index -> no extra DMA
    kidx = jnp.asarray(kidx_np.reshape(-1))       # flat 1-D (cheap SMEM layout)
    cnt = jnp.asarray(cnt_np)

    # index_maps receive the scalar-prefetch refs as trailing positional args.
    def adj_map(i, j, k, kidx_ref, cnt_ref, _mn=max_nnz):
        return (i, kidx_ref[i * _mn + k])

    def feat_map(i, j, k, kidx_ref, cnt_ref, _mn=max_nnz):
        return (kidx_ref[i * _mn + k], j)

    def out_map(i, j, k, kidx_ref, cnt_ref):
        return (i, j)

    nnz_blocks = int(cnt_np.sum())
    cost = pl.CostEstimate(
        flops=2 * nnz_blocks * n_j * tm * tk * tn,
        transcendentals=0,
        bytes_accessed=nnz_blocks * n_j * (tm * tk + tk * tn) * 2 + Np * Dp * 4,
    )

    out = pl.pallas_call(
        _sgcn_bsr_kernel,
        out_shape=jax.ShapeDtypeStruct((Np, Dp), out_dtype),
        grid_spec=pltpu.PrefetchScalarGridSpec(
            num_scalar_prefetch=2,
            grid=(n_i, n_j, max_nnz),
            in_specs=[
                pl.BlockSpec((tm, tk), adj_map),    # adj tile (nonzero blocks only)
                pl.BlockSpec((tk, tn), feat_map),   # matching feat tile
            ],
            out_specs=pl.BlockSpec((tm, tn), out_map),
            scratch_shapes=[pltpu.VMEM((tm, tn), jnp.float32)],
        ),
        compiler_params=pltpu.CompilerParams(
            dimension_semantics=("parallel", "parallel", "arbitrary"),
            vmem_limit_bytes=32 * 1024 * 1024,
        ),
        cost_estimate=cost,
    )(kidx, cnt, adj_b, feat_b)

    return out[:N, :D]


if __name__ == "__main__":
    # Small synthetic graph: N nodes, D-dim features.
    N, D = 256, 128
    key = jax.random.PRNGKey(0)
    k_adj, k_mask, k_feat = jax.random.split(key, 3)

    # Sparse-ish normalized adjacency (dense storage, ~10% nonzeros), with an
    # explicit all-zero block so the block-sparse skip path is exercised.
    vals = jax.random.uniform(k_adj, (N, N), dtype=jnp.float32)
    mask = (jax.random.uniform(k_mask, (N, N)) < 0.1).astype(jnp.float32)
    mask = mask.at[: N // 2, N // 2 :].set(0.0)   # whole (128,128) zero block
    adj = vals * mask
    row_sum = jnp.maximum(adj.sum(axis=1, keepdims=True), 1e-6)
    adj = adj / row_sum

    feat = jax.random.normal(k_feat, (N, D), dtype=jnp.float32)

    # tk=128 at this small size gives 2 k-blocks per row-block, so row-block 0
    # has cnt=1 < max_nnz=2 and the pl.when guard / padded-index path runs.
    out = sgcn_conv(adj, feat, tk=128)
    out = jax.block_until_ready(out)

    # correctness check against a plain f32 JAX reference
    ref = jnp.dot(adj, feat, precision=jax.lax.Precision.HIGHEST)
    assert out.shape == (N, D)
    max_err = float(jnp.max(jnp.abs(out - ref)))
    assert jnp.allclose(out, ref, atol=3e-2, rtol=3e-2), (
        f"mismatch vs reference (max abs err {max_err})"
    )

    print("KERNEL_OK")
</pallas_src>

<mosaic_0001>
module attributes {stable_mosaic.version = 11 : i64} {
  func.func @_sgcn_bsr_kernel(%arg0: i32, %arg1: i32, %arg2: i32, %arg3: memref<4xi32, #tpu.memory_space<smem>>, %arg4: memref<2xi32, #tpu.memory_space<smem>>, %arg5: memref<128x128xbf16, #tpu.memory_space<vmem>>, %arg6: memref<128x128xbf16, #tpu.memory_space<vmem>>, %arg7: memref<128x128xf32, #tpu.memory_space<vmem>>, %arg8: memref<128x128xf32, #tpu.memory_space<vmem>>) attributes {dimension_semantics = [#tpu.dimension_semantics<parallel>, #tpu.dimension_semantics<parallel>, #tpu.dimension_semantics<arbitrary>], iteration_bounds = array<i64: 2, 1, 2>, scalar_prefetch = 2 : i64, scratch_operands = 1 : i64, tpu.core_type = #tpu.core_type<tc>, window_params = [{transform_indices = @transform_0, window_bounds = array<i64: 128, 128>}, {transform_indices = @transform_1, window_bounds = array<i64: 128, 128>}, {transform_indices = @transform_2, window_bounds = array<i64: 128, 128>}]} {
    %c0_i32 = arith.constant 0 : i32
    %0 = arith.cmpi eq, %arg2, %c0_i32 : i32
    %1 = arith.extui %0 : i1 to i32
    %c0_i32_0 = arith.constant 0 : i32
    %2 = arith.cmpi ne, %1, %c0_i32_0 : i32
    scf.if %2 {
      %cst = arith.constant 0.000000e+00 : f32
      %11 = vector.broadcast %cst : f32 to vector<128x128xf32>
      %c0 = arith.constant 0 : index
      %c0_3 = arith.constant 0 : index
      %12 = vector.load %arg8[%c0, %c0_3] : memref<128x128xf32, #tpu.memory_space<vmem>>, vector<128x128xf32>
      tpu.vector_store %arg8[%c0, %c0_3], %11 {strides = array<i32>} : memref<128x128xf32, #tpu.memory_space<vmem>>, vector<128x128xf32>,
    } else {
    }
    %3 = arith.index_cast %arg0 : i32 to index
    %4 = memref.load %arg4[%3] : memref<2xi32, #tpu.memory_space<smem>>
    %5 = arith.cmpi slt, %arg2, %4 : i32
    %6 = arith.extui %5 : i1 to i32
    %c0_i32_1 = arith.constant 0 : i32
    %7 = arith.cmpi ne, %6, %c0_i32_1 : i32
    scf.if %7 {
      %c0 = arith.constant 0 : index
      %c0_3 = arith.constant 0 : index
      %11 = vector.load %arg8[%c0, %c0_3] : memref<128x128xf32, #tpu.memory_space<vmem>>, vector<128x128xf32>
      %c0_4 = arith.constant 0 : index
      %c0_5 = arith.constant 0 : index
      %12 = vector.load %arg5[%c0_4, %c0_5] : memref<128x128xbf16, #tpu.memory_space<vmem>>, vector<128x128xbf16>
      %c0_6 = arith.constant 0 : index
      %c0_7 = arith.constant 0 : index
      %13 = vector.load %arg6[%c0_6, %c0_7] : memref<128x128xbf16, #tpu.memory_space<vmem>>, vector<128x128xbf16>
      %cst = arith.constant dense<0.000000e+00> : vector<128x128xf32>
      %14 = tpu.matmul %12, %13, %cst {dimension_numbers = #tpu.dot_dimension_numbers<[1], [0], [0], [1], [0, 0, 1, 1], [], []>} : vector<128x128xbf16>, vector<128x128xbf16>, vector<128x128xf32> -> vector<128x128xf32>
      %15 = arith.addf %11, %14 : vector<128x128xf32>
      %c0_8 = arith.constant 0 : index
      %c0_9 = arith.constant 0 : index
      %16 = vector.load %arg8[%c0_8, %c0_9] : memref<128x128xf32, #tpu.memory_space<vmem>>, vector<128x128xf32>
      tpu.vector_store %arg8[%c0_8, %c0_9], %15 {strides = array<i32>} : memref<128x128xf32, #tpu.memory_space<vmem>>, vector<128x128xf32>,
    } else {
    }
    %c1_i32 = arith.constant 1 : i32
    %8 = arith.cmpi eq, %arg2, %c1_i32 : i32
    %9 = arith.extui %8 : i1 to i32
    %c0_i32_2 = arith.constant 0 : i32
    %10 = arith.cmpi ne, %9, %c0_i32_2 : i32
    scf.if %10 {
      %c0 = arith.constant 0 : index
      %c0_3 = arith.constant 0 : index
      %11 = vector.load %arg8[%c0, %c0_3] : memref<128x128xf32, #tpu.memory_space<vmem>>, vector<128x128xf32>
      %c0_4 = arith.constant 0 : index
      %c0_5 = arith.constant 0 : index
      %12 = vector.load %arg7[%c0_4, %c0_5] : memref<128x128xf32, #tpu.memory_space<vmem>>, vector<128x128xf32>
      tpu.vector_store %arg7[%c0_4, %c0_5], %11 {strides = array<i32>} : memref<128x128xf32, #tpu.memory_space<vmem>>, vector<128x128xf32>,
    } else {
    }
    return
  }
  func.func @transform_0(%arg0: i32, %arg1: i32, %arg2: i32, %arg3: memref<4xi32, #tpu.memory_space<smem>>, %arg4: memref<2xi32, #tpu.memory_space<smem>>) -> (i32, i32) {
    %c2_i32 = arith.constant 2 : i32
    %0 = arith.muli %arg0, %c2_i32 : i32
    %1 = arith.addi %0, %arg2 : i32
    %2 = arith.index_cast %1 : i32 to index
    %3 = memref.load %arg3[%2] : memref<4xi32, #tpu.memory_space<smem>>
    %c0_i32 = arith.constant 0 : i32
    return %arg0, %3 : i32, i32
  }
  func.func @transform_1(%arg0: i32, %arg1: i32, %arg2: i32, %arg3: memref<4xi32, #tpu.memory_space<smem>>, %arg4: memref<2xi32, #tpu.memory_space<smem>>) -> (i32, i32) {
    %c2_i32 = arith.constant 2 : i32
    %0 = arith.muli %arg0, %c2_i32 : i32
    %1 = arith.addi %0, %arg2 : i32
    %2 = arith.index_cast %1 : i32 to index
    %3 = memref.load %arg3[%2] : memref<4xi32, #tpu.memory_space<smem>>
    %c0_i32 = arith.constant 0 : i32
    return %3, %arg1 : i32, i32
  }
  func.func @transform_2(%arg0: i32, %arg1: i32, %arg2: i32, %arg3: memref<4xi32, #tpu.memory_space<smem>>, %arg4: memref<2xi32, #tpu.memory_space<smem>>) -> (i32, i32) {
    %c0_i32 = arith.constant 0 : i32
    return %arg0, %arg1 : i32, i32
  }
}

</mosaic_0001>

<bundles_post_ra>
// kernel: tpu_custom_call.1
= control target key start
LH: loop header
LB: loop body
LE: loop exit
PB: predicated region body
PF: predicated region fallthrough
CT: control target
= control target key end

     0   :  { %s1236_s15 = smov [#allocation4]   ;;  %s1677_s0 = inlined_call_operand.hbm [shape: s32[4], index: 0, kind: input, shape index: {}]   ;;  %s1678_s2 = inlined_call_operand.hbm [shape: bf16[256,256], index: 2, kind: input, shape index: {}]   ;;  %s1679_s3 = inlined_call_operand.hbm [shape: bf16[256,128], index: 3, kind: input, shape index: {}]   ;;  %s1680_s4 = inlined_call_operand.hbm [shape: f32[256,128], index: 4, kind: output, shape index: {}]   ;;  %s1681_s1 = inlined_call_operand.vmem [shape: s32[2], index: 1, kind: input, shape index: {}]  }
   0x1   :  { %1694 = sst [smem:[#allocation27_spill]] %s1680_s4  ;;  %s11_s20 = sshll.u32 %s1681_s1, 4  ;;  %s12_s20 = int_to_ptr.vmem [resolvable:$true] %s11_s20 }
   0x2   :  { %10 = dma.hbm_to_smem %s1677_s0, 16, %s1236_s15, [#allocation3] }
   0x3   :  { %s1016_s21 = scalar_lea.vmem %s12_s20, 16  ;;  %p1021_p1 = scmp.lt.s32.totalorder %s12_s20, %s12_s20 }
   0x4   :  { %p1017_p0 = scmp.ne.s32.totalorder %s12_s20, %s1016_s21  ;;  %p1022_p2 = scmp.lt.s32.totalorder %s1016_s21, %s1016_s21 }
   0x6   :  { %p1023_p3 = por %p1022_p2, %p1021_p1 }
   0x8   :  { %p1024_p4 = pnand %p1023_p3, %p1017_p0 }
   0xa   :  { %1027 = shalt.err (!%p1024_p4)  }
   0xb   :  { %s1237_s22 = smov [#allocation5]  }
   0xc   :  { %14 = dma.vmem_to_smem %s12_s20, 16, %s1237_s22, [#allocation3] }
   0xd   :  { %1166 = dma.done.wait [#allocation3], 32 }
   0xe   :  { %1167 = vsyncadd [#allocation3], 4294967264 }
   0xf   :  { %16 = sfence }
  0x10   :  { %17 = vsyncpa [#allocation7], 0 }
  0x11   :  { %19 = vsyncpa [#allocation7 + $0x1], 0 }
  0x12   :  { %20 = vsyncpa [#allocation10], 0 }
  0x13   :  { %22 = vsyncpa [#allocation10 + $0x1], 0 }
  0x14   :  { %23 = vsyncpa [#allocation8], 0 }
  0x15   :  { %25 = vsyncpa [#allocation8 + $0x1], 0  ;;  %s1278_s0 = smov 0   ;;  %s1280_s1 = smov 0  }
  0x16   :  { %s1282_s23 = smov 0   ;;  %s1284_s24 = smov 0  }
  0x17   :  { %s1286_s25 = smov 0   ;;  %s1288_s26 = smov 0  }
  0x18   :  { %s1290_s27 = smov 0   ;;  %s1292_s28 = smov 0  }
  0x19   :  { %s1294_s29 = smov 0   ;;  %s1296_s30 = smov 0  }
  0x1a   :  { %s1298_s5 = smov 0   ;;  %s1300_s6 = smov 0  }
  0x1b   :  { %s1302_s7 = smov 0   ;;  %s1304_s8 = smov 0  }
  0x1c LB: > { %1695 = sst [smem:[#allocation20_spill]] %s1218_s30  ;;  %s43_s9 = sadd.s32 1, %s1226_s6  ;;  %s1234_s8 = sphi %s1304_s8, %s31_s8   ;;  %s1230_s7 = sphi %s1302_s7, %s1748_s7   ;;  %s1226_s6 = sphi %s1300_s6, %s1747_s6   ;;  %s1222_s5 = sphi %s1298_s5, %s1734_s5   ;;  %s1218_s30 = sphi %s1296_s30, %s1733_s30   ;;  %s1214_s29 = sphi %s1294_s29, %s1746_s29   ;;  %s1210_s28 = sphi %s1292_s28, %s1745_s28   ;;  %s1206_s27 = sphi %s1290_s27, %s1744_s27   ;;  %s1202_s26 = sphi %s1288_s26, %s1743_s26   ;;  %s1198_s25 = sphi %s1286_s25, %s1742_s25   ;;  %s1194_s24 = sphi %s1284_s24, %s1741_s24   ;;  %s1190_s23 = sphi %s1282_s23, %s1740_s23   ;;  %s1186_s1 = sphi %s1280_s1, %s1739_s1   ;;  %s1182_s0 = sphi %s1278_s0, %s1738_s0  }
  0x1d   : > { %1696 = sst [smem:[#allocation21_spill]] %s1222_s5  ;;  %s50_s10 = sadd.s32 1, %s1230_s7 }
  0x1e   : > { %1697 = sst [smem:[#allocation22_spill]] %s1226_s6  ;;  %p44_p5 = scmp.ge.s32.totalorder %s43_s9, 2 }
  0x1f   : > { %1698 = sst [smem:[#allocation23_spill]] %s1230_s7  ;;  %s735_s11 = sshll.u32 %s1230_s7, 1 }
  0x20   : > { %s1352_s12 = sadd.s32 %s1226_s6, %s735_s11  ;;  %s1750_s9 = smov (%p44_p5, %s43_s9), 0 }
  0x21   : > { %1699 = sst [smem:[#allocation24_spill]] %s1750_s9  ;;  %s1752_s10 = smov (!%p44_p5, %s50_s10), %s1230_s7 }
  0x22   : > { %s56_s14 = sld [smem:[#allocation4 + %s1352_s12]]  ;;  %p72_p6 = scmp.ne.s32.totalorder %s1214_s29, %s1210_s28 }
  0x23   : > { %p52_p7 = scmp.ge.s32.totalorder %s1752_s10, 2  ;;  %p1688_p8 = scmp.eq.s32.totalorder %s1234_s8, 0 }
  0x24   : > { %s127_s15 = sadd.s32 1, %s1190_s23  ;;  %p1687_p12 = scmp.lt.s32.totalorder %s1234_s8, 4 }
  0x25   : > { %s1754_s10 = smov (%p52_p7, %s1752_s10), 0  ;;  %p1369_p10 = por %p1688_p8, %p72_p6 }
  0x26   : > { %1700 = sst [smem:[#allocation25_spill]] %s1754_s10  ;;  %s736_s17 = sshll.u32 %s1754_s10, 1 }
  0x27   : > { %s60_s18 = ssub.s32 %s1230_s7, %s1754_s10  ;;  %s1377_s19 = sadd.s32 %s736_s17, %s1750_s9 }
  0x28   : > { %p125_p11 = scmp.eq.s32.totalorder %s60_s18, 0  ;;  %s59_s20 = sld [smem:[#allocation4 + %s1377_s19]] }
  0x29   : > { %s164_s22 = sand.u32 1, %s1214_s29   ;;  %s778_s11 = sshll.u32 %s1230_s7, 5 }
  0x2a   : > { %s1382_s21 = scalar_select %p125_p11, %s1190_s23, %s127_s15  }
  0x2b   : > { %s741_s13 = sshll.u32 %s164_s22, 6  ;;  %p1390_p13 = pnand %p1687_p12, %p1369_p10 }
  0x2c   : > { %1702 = sst [smem:[#allocation26_spill]] %s1382_s21  ;;  %s168_s6 = scalar_lea.vmem [#allocation6], %s741_s13 }
  0x2d   : > { %s845_s10 = scalar_select %p1369_p10, [#allocation4], [#allocation12] }
  0x2e   : > { %s61_s9 = ssub.s32 %s56_s14, %s59_s20  ;;  %s180_s4 = sshll.u32 %s168_s6, 4  ;;  %s1396_s4 = int_to_ptr.vmem [resolvable:$true] %s180_s4 }
  0x2f   : > { %s62_s5 = sor.u32 %s61_s9, %s60_s18  ;;  %s1704_s7 = sadd.s32 1, %s1214_s29 }
  0x30   : > { %p63_p0 = scmp.eq.s32.totalorder %s62_s5, 0  ;;  %s1756_s10 = smov (!%p1687_p12, %s845_s10), [#allocation14] }
  0x31   : > { %s846_s15 = scalar_select %p1369_p10, %s1352_s12, 0 }
  0x32   : > { %s1404_s21 = scalar_select %p63_p0, %s1214_s29, %s1704_s7  }
  0x33   : > { %s1758_s15 = smov (!%p1687_p12, %s846_s15), 0  ;;  %p750_p1 = scmp.ge.s32.totalorder %s1234_s8, 1 }
  0x34   : > { %s171_s30 = sld [smem:[%s1756_s10 + %s1758_s15]]  ;;  %p213_p2 = scmp.lt.s32.totalorder %s1234_s8, 5 }
  0x35   : > { %s1421_s7 = scalar_lea.sflag [#allocation7], %s164_s22  ;;  %p1030_p5 = pneg %p1390_p13 }
  0x36   : > { %p1412_p3 = pnand %p750_p1, %p213_p2 }
  0x38   : > { %s1705_s13 = scalar_select %p1412_p3, 1, 0 }
  0x3a   : > { %s177_s6 = sadd.s32 %s778_s11, %s171_s30  ;;  %s1033_s30 = scalar_lea.hbm %s1678_s2, 4096 }
  0x3b   : > { %s745_s9 = sshll.u32 %s177_s6, 6 }
  0x3c   : > { %s1419_s16 = scalar_lea.hbm %s1678_s2, %s745_s9 }
  0x3d   : > { %s1028_s18 = scalar_lea.hbm %s1419_s16, 1024  ;;  %p1034_p10 = scmp.lt.s32.totalorder %s1419_s16, %s1678_s2 }
  0x3e   : > { %p1029_p4 = scmp.ne.s32.totalorder %s1419_s16, %s1028_s18  ;;  %p1035_p11 = scmp.lt.s32.totalorder %s1033_s30, %s1028_s18 }
  0x40   : > { %p1031_p6 = pnand %p1030_p5, %p1029_p4  ;;  %p1036_p0 = por %p1035_p11, %p1034_p10 }
  0x42   : > { %p1032_p7 = pneg %p1031_p6 }
  0x44   : > { %p1037_p1 = pnand %p1036_p0, %p1032_p7 }
  0x46   : > { %1040 = shalt.err (!%p1037_p1)
}
  0x47   : > { %s1041_s22 = scalar_lea.vmem %s1396_s4, 1024  ;;  %s1238_s6 = smov [#allocation6]  }
  0x48   : > { %p1042_p2 = scmp.ne.s32.totalorder %s1396_s4, %s1041_s22  ;;  %s1046_s9 = sshll.u32 %s1238_s6, 4  ;;  %s1047_s9 = int_to_ptr.vmem [resolvable:$false] %s1046_s9 }
  0x49   : > { %s1048_s14 = scalar_lea.vmem %s1047_s9, 2048  ;;  %p1049_p6 = scmp.lt.s32.totalorder %s1396_s4, %s1047_s9 }
  0x4a   : > { %p1044_p12 = pnand %p1042_p2, %p1030_p5  ;;  %p1050_p8 = scmp.lt.s32.totalorder %s1048_s14, %s1041_s22 }
  0x4c   : > { %p1045_p4 = pneg %p1044_p12  ;;  %p1051_p9 = por %p1050_p8, %p1049_p6 }
  0x4e   : > { %p1052_p3 = pnand %p1051_p9, %p1045_p4 }
  0x50   : > { %1055 = shalt.err (!%p1052_p3)
}
  0x51   : > { %s1239_s5 = smov 128   ;;  %s1689_s18 = smov 64  }
  0x52   : > { %s1690_s10 = smov 4   ;;  %s733_s20 = sadd.s32 4294967295, %s1234_s8  }
  0x53   : > { %860 = dma.hbm_to_vmem [thread:$0]  (!%p1390_p13), %s1419_s16, 1024, %s1396_s4, %s1421_s7, %s1239_s5, %s1689_s18, %s1690_s10  }
  0x54   : > { %s734_s30 = sadd.s32 4294967294, %s1234_s8   ;;  %p79_p8 = scmp.eq.s32.totalorder %s733_s20, 0 }
  0x55   : > { %s90_s11 = sld [smem:[#allocation4 + %s1352_s12]]  ;;  %s99_s22 = sadd.s32 1, %s1202_s26 }
  0x56   : > { %s93_s15 = sld [smem:[#allocation4 + %s1377_s19]]  ;;  %p1706_p9 = scmp.ne.s32.totalorder %s1210_s28, %s1206_s27 }
  0x57   : > { %p106_p3 = scmp.ne.s32.totalorder %s1202_s26, %s1198_s25  ;;  %p112_p5 = scmp.ne.s32.totalorder %s1198_s25, %s1194_s24 }
  0x58   : > { %p1452_p12 = por %p79_p8, %p1706_p9  ;;  %p137_p7 = scmp.ne.s32.totalorder %s1190_s23, %s1186_s1 }
  0x59   : > { %p1708_p10 = scmp.eq.s32.totalorder %s1234_s8, 0  ;;  %p138_p11 = scmp.eq.s32.totalorder %s733_s20, 3 }
  0x5a   : > { %s1707_s6 = scalar_select %p1452_p12, 1, 0 }
  0x5b   : > { %p1464_p13 = por %p106_p3, %p1708_p10  ;;  %p1468_p0 = por %p112_p5, %p79_p8 }
  0x5c   : > { %p143_p1 = scmp.ne.s32.totalorder %s1186_s1, %s1182_s0  ;;  %p1474_p2 = por %p138_p11, %p137_p7 }
  0x5d   : > { %s1710_s27 = scalar_select %p1468_p0, 1, 0 }
  0x5e   : > { %s1711_s24 = scalar_select %p1474_p2, 1, 0 }
  0x5f   : > { %p144_p4 = scmp.eq.s32.totalorder %s734_s30, 3  ;;  %s94_s19 = ssub.s32 %s90_s11, %s93_s15 }
  0x60   : > { %s190_s17 = sand.u32 1, %s1202_s26   ;;  %p97_p6 = scmp.eq.s32.totalorder %s94_s19, 0 }
  0x61   : > { %p1479_p9 = por %p144_p4, %p143_p1  ;;  %s746_s9 = sshll.u32 %s190_s17, 6 }
  0x62   : > { %s1484_s7 = scalar_select %p97_p6, %s1202_s26, %s99_s22  }
  0x63   : > { %s1712_s16 = scalar_select %p1479_p9, 1, 0 }
  0x64   : > { %p1713_p8 = scmp.lt.s32.totalorder %s1234_s8, 4  ;;  %s1760_s12 = smov (!%p1464_p13, %s1352_s12), 0 }
  0x65   : > { %s848_s5 = scalar_select %p1464_p13, [#allocation4], [#allocation13] }
  0x66   : > { %p1490_p3 = pnand %p1713_p8, %p1464_p13  ;;  %p1715_p5 = pmov %p1713_p8 }
  0x67   : > { %s194_s30 = scalar_lea.vmem [#allocation9], %s746_s9  ;;  %s1510_s4 = scalar_lea.sflag [#allocation10], %s190_s17 }
  0x68   : > { %s1762_s5 = smov (!%p1715_p5, %s848_s5), [#allocation15]  ;;  %p1716_p7 = pmov %p1715_p5 }
  0x69   : > { %s205_s11 = sshll.u32 %s194_s30, 4  ;;  %p1058_p13 = pneg %p1490_p3  ;;  %s1503_s11 = int_to_ptr.vmem [resolvable:$true] %s205_s11 }
  0x6a   : > { %s1764_s12 = smov (!%p1716_p7, %s1760_s12), 0 }
  0x6b   : > { %s197_s20 = sld [smem:[%s1762_s5 + %s1764_s12]]  ;;  %s1061_s5 = scalar_lea.hbm %s1679_s3, 2048 }
  0x71   : > { %s779_s15 = sshll.u32 %s197_s20, 10 }
  0x72   : > { %s1508_s18 = scalar_lea.hbm %s1679_s3, %s779_s15 }
  0x73   : > { %s1056_s10 = scalar_lea.hbm %s1508_s18, 1024  ;;  %p1062_p4 = scmp.lt.s32.totalorder %s1508_s18, %s1679_s3 }
  0x74   : > { %p1057_p10 = scmp.ne.s32.totalorder %s1508_s18, %s1056_s10  ;;  %p1063_p6 = scmp.lt.s32.totalorder %s1061_s5, %s1056_s10 }
  0x76   : > { %p1059_p11 = pnand %p1058_p13, %p1057_p10  ;;  %p1064_p8 = por %p1063_p6, %p1062_p4 }
  0x78   : > { %p1060_p1 = pneg %p1059_p11 }
  0x7a   : > { %p1065_p5 = pnand %p1064_p8, %p1060_p1 }
  0x7c   : > { %1068 = shalt.err (!%p1065_p5)
}
  0x7d   : > { %s1069_s17 = scalar_lea.vmem %s1503_s11, 1024  ;;  %s1242_s15 = smov [#allocation9]  }
  0x7e   : > { %p1070_p7 = scmp.ne.s32.totalorder %s1503_s11, %s1069_s17  ;;  %s1074_s22 = sshll.u32 %s1242_s15, 4  ;;  %s1075_s22 = int_to_ptr.vmem [resolvable:$false] %s1074_s22 }
  0x7f   : > { %s1076_s19 = scalar_lea.vmem %s1075_s22, 2048  ;;  %p1077_p11 = scmp.lt.s32.totalorder %s1503_s11, %s1075_s22 }
  0x80   : > { %p1072_p9 = pnand %p1070_p7, %p1058_p13  ;;  %p1078_p2 = scmp.lt.s32.totalorder %s1076_s19, %s1069_s17 }
  0x82   : > { %p1073_p10 = pneg %p1072_p9  ;;  %p1079_p0 = por %p1078_p2, %p1077_p11 }
  0x84   : > { %p1080_p12 = pnand %p1079_p0, %p1073_p10 }
  0x86   : > { %1083 = shalt.err (!%p1080_p12)
}
  0x87   : > { %s1717_s10 = smov 4   ;;  %s1718_s12 = smov 64  }
  0x88   : > { %865 = dma.hbm_to_vmem [thread:$0]  (!%p1490_p3), %s1508_s18, 1024, %s1503_s11, %s1510_s4, %s1718_s12, %s1718_s12, %s1717_s10  }
  0x89   : > { %p1719_p9 = scmp.ne.s32.totalorder %s1705_s13, 0 }
  0x8a   : > { %s219_s9 = sand.u32 (!%p1719_p9), 1, %s1210_s28   ;;  %p1720_p12 = scmp.ne.s32.totalorder (!%p1719_p9), %s1707_s6, 0 }
  0x8b   : > { %217 = sbr.rel (%p1719_p9) target bundleno = 482 (0x1e2), region = 28  ;;  %s751_s5 = sshll.u32 (!%p1719_p9), %s219_s9, 6 }
  0x8c   : > { %s220_s20 = scalar_lea.sflag (!%p1719_p9), [#allocation7], %s219_s9  ;;  %s1537_s30 = scalar_lea.vmem (!%p1719_p9), [#allocation6], %s751_s5 }
  0x90   : > { %1169 = dma.done.wait (%p1720_p12), %s220_s20, 1024  }
  0x91   : > { %1171 = vsyncadd (%p1720_p12), %s220_s20, 4294966272  ;;  %s228_s14 = sand.u32 1, %s1198_s25   ;;  %p1721_p0 = scmp.ne.s32.totalorder %s1710_s27, 0 }
  0x92   : > { %s752_s17 = sshll.u32 %s228_s14, 6  ;;  %s229_s18 = scalar_lea.sflag [#allocation10], %s228_s14 }
  0x93   : > { %s1544_s11 = scalar_lea.vmem [#allocation9], %s752_s17 }
  0x94   : > { %1173 = dma.done.wait (%p1721_p0), %s229_s18, 1024  }
  0x95   : > { %1175 = vsyncadd (%p1721_p0), %s229_s18, 4294966272  ;;  %s255_s13 = sand.u32 1, %s1186_s1   ;;  %s1722_s6 = sld [smem:[#allocation20_spill]] }
  0x96   : > { %s753_s4 = sshll.u32 %s255_s13, 7 }
  0x97   : > { %s1553_s15 = scalar_lea.vmem [#allocation11], %s753_s4 }
  0x9b   : > { %p754_p2 = scmp.ne.s32.totalorder %s1722_s6, 0 }
  0x9d   : > { %271 = sbr.rel (%p754_p2) target bundleno = 171 (0xab), region = 40 }
  0xa2   : > { %v1243_v0 = vmov 0.0  }
  0xa3   : > { %272 = vst [vmem:[#allocation2 + $0x30] sm:$0xff] %v1243_v0  ;;  %273 = vst [vmem:[#allocation2] sm:$0xff] %v1243_v0 }
  0xa4   : > { %274 = vst [vmem:[#allocation2 + $0x58] sm:$0xff] %v1243_v0  ;;  %275 = vst [vmem:[#allocation2 + $0x18] sm:$0xff] %v1243_v0 }
  0xa5   : > { %276 = vst [vmem:[#allocation2 + $0x50] sm:$0xff] %v1243_v0  ;;  %277 = vst [vmem:[#allocation2 + $0x68] sm:$0xff] %v1243_v0 }
  0xa6   : > { %278 = vst [vmem:[#allocation2 + $0x8] sm:$0xff] %v1243_v0  ;;  %279 = vst [vmem:[#allocation2 + $0x48] sm:$0xff] %v1243_v0 }
  0xa7   : > { %280 = vst [vmem:[#allocation2 + $0x40] sm:$0xff] %v1243_v0  ;;  %281 = vst [vmem:[#allocation2 + $0x20] sm:$0xff] %v1243_v0 }
  0xa8   : > { %282 = vst [vmem:[#allocation2 + $0x10] sm:$0xff] %v1243_v0  ;;  %283 = vst [vmem:[#allocation2 + $0x38] sm:$0xff] %v1243_v0 }
  0xa9   : > { %284 = vst [vmem:[#allocation2 + $0x60] sm:$0xff] %v1243_v0  ;;  %285 = vst [vmem:[#allocation2 + $0x70] sm:$0xff] %v1243_v0 }
  0xaa   : > { %286 = vst [vmem:[#allocation2 + $0x78] sm:$0xff] %v1243_v0  ;;  %287 = vst [vmem:[#allocation2 + $0x28] sm:$0xff] %v1243_v0 }
  0xab PF: > { %s1723_s27 = sld [smem:[#allocation21_spill]] }
  0xac   : > { %s1724_s19 = sld [smem:[#allocation20_spill]] }
  0xb1   : > { %s288_s22 = sld [smem:[#allocation5 + %s1723_s27]] }
  0xb7   : > { %p755_p3 = scmp.ge.s32.totalorder %s1724_s19, %s288_s22 }
  0xb9   : > { %292 = sbr.rel (%p755_p3) target bundleno = 433 (0x1b1), region = 44 }
  0xbe   : > { %v992_v1 = vld [vmem:[%s1544_s11 + $0x38] sm:$0xff]   ;;  %v993_v2 = vld [vmem:[%s1544_s11 + $0x30] sm:$0xff]   ;;  %v994_v3 = vld [vmem:[%s1544_s11 + $0x28] sm:$0xff]  }
  0xbf   : > { %797 = vmatprep.subr.bf16.mxu0 %v992_v1  ;;  %829 = vmatprep.subr.bf16.mxu1 %v992_v1  ;;  %v995_v4 = vld [vmem:[%s1544_s11 + $0x20] sm:$0xff]   ;;  %v996_v7 = vld [vmem:[%s1544_s11 + $0x18] sm:$0xff]   ;;  %v997_v8 = vld [vmem:[%s1544_s11 + $0x10] sm:$0xff]  }
  0xc0   : > { %798 = vmatpush3.bf16.msra.mxu0 %v992_v1  ;;  %837 = vmatpush3.bf16.msra.mxu1 %v992_v1  ;;  %v1000_v5 = vld [vmem:[%s1537_s30] sm:$0xff]   ;;  %v998_v9 = vld [vmem:[%s1544_s11 + $0x8] sm:$0xff]   ;;  %v1004_v13 = vld [vmem:[%s1537_s30 + $0x10] sm:$0xff]  }
  0xc1   : > { %799 = vmatprep.subr.bf16.mxu0 %v993_v2  ;;  %830 = vmatprep.subr.bf16.mxu1 %v993_v2  ;;  %v1001_v6 = vld [vmem:[%s1537_s30 + $0x20] sm:$0xff]   ;;  %v1002_v11 = vld [vmem:[%s1537_s30 + $0x8] sm:$0xff]   ;;  %v1005_v14 = vld [vmem:[%s1537_s30 + $0x30] sm:$0xff]  }
  0xc2   : > { %813 = vmatprep.mubr.bf16.mxu0 %v1000_v5  ;;  %821 = vmatprep.mubr.bf16.mxu1 %v1001_v6  ;;  %v999_v10 = vld [vmem:[%s1544_s11] sm:$0xff]   ;;  %v1003_v12 = vld [vmem:[%s1537_s30 + $0x28] sm:$0xff]   ;;  %v1006_v15 = vld [vmem:[%s1537_s30 + $0x18] sm:$0xff]  }
  0xc3   : > { %v1007_v16 = vld [vmem:[%s1537_s30 + $0x38] sm:$0xff]   ;;  %v303_v18 = vld [vmem:[#allocation2 + $0x10] sm:$0xff]  ;;  %v301_v22 = vld [vmem:[#allocation2 + $0x40] sm:$0xff] }
  0xc4   : > { %800 = vmatpush3.bf16.msra.mxu0 %v993_v2  ;;  %838 = vmatpush3.bf16.msra.mxu1 %v993_v2  ;;  %v295_v17 = vld [vmem:[#allocation2 + $0x58] sm:$0xff]  ;;  %v293_v21 = vld [vmem:[#allocation2 + $0x30] sm:$0xff]  ;;  %v294_v33 = vld [vmem:[#allocation2] sm:$0xff] }
  0xc5   : > { %801 = vmatprep.subr.bf16.mxu0 %v994_v3  ;;  %831 = vmatprep.subr.bf16.mxu1 %v994_v3  ;;  %v296_v27 = vld [vmem:[#allocation2 + $0x18] sm:$0xff]  ;;  %v302_v34 = vld [vmem:[#allocation2 + $0x20] sm:$0xff]  ;;  %v299_v39 = vld [vmem:[#allocation2 + $0x8] sm:$0xff] }
  0xc6   : > { %v304_v28 = vld [vmem:[#allocation2 + $0x38] sm:$0xff]  ;;  %v297_v45 = vld [vmem:[#allocation2 + $0x50] sm:$0xff]  ;;  %v305_v46 = vld [vmem:[#allocation2 + $0x60] sm:$0xff] }
  0xc7   : > { %v307_v40 = vld [vmem:[#allocation2 + $0x78] sm:$0xff]  ;;  %v300_v51 = vld [vmem:[#allocation2 + $0x48] sm:$0xff]  ;;  %v306_v58 = vld [vmem:[#allocation2 + $0x70] sm:$0xff] }
  0xc8   : > { %802 = vmatpush3.bf16.msra.mxu0 %v994_v3  ;;  %839 = vmatpush3.bf16.msra.mxu1 %v994_v3  ;;  %v308_v52 = vld [vmem:[#allocation2 + $0x28] sm:$0xff] }
  0xc9   : > { %803 = vmatprep.subr.bf16.mxu0 %v995_v4  ;;  %832 = vmatprep.subr.bf16.mxu1 %v995_v4  ;;  %v298_v57 = vld [vmem:[#allocation2 + $0x68] sm:$0xff] }
  0xcc   : > { %804 = vmatpush3.bf16.msra.mxu0 %v995_v4  ;;  %840 = vmatpush3.bf16.msra.mxu1 %v995_v4 }
  0xcd   : > { %805 = vmatprep.subr.bf16.mxu0 %v996_v7  ;;  %833 = vmatprep.subr.bf16.mxu1 %v996_v7 }
  0xd0   : > { %806 = vmatpush3.bf16.msra.mxu0 %v996_v7  ;;  %841 = vmatpush3.bf16.msra.mxu1 %v996_v7 }
  0xd1   : > { %807 = vmatprep.subr.bf16.mxu0 %v997_v8  ;;  %834 = vmatprep.subr.bf16.mxu1 %v997_v8 }
  0xd4   : > { %808 = vmatpush3.bf16.msra.mxu0 %v997_v8  ;;  %842 = vmatpush3.bf16.msra.mxu1 %v997_v8 }
  0xd5   : > { %809 = vmatprep.subr.bf16.mxu0 %v998_v9  ;;  %835 = vmatprep.subr.bf16.mxu1 %v998_v9 }
  0xd8   : > { %810 = vmatpush3.bf16.msra.mxu0 %v998_v9  ;;  %843 = vmatpush3.bf16.msra.mxu1 %v998_v9 }
  0xd9   : > { %811 = vmatprep.subr.bf16.mxu0 %v999_v10  ;;  %836 = vmatprep.subr.bf16.mxu1 %v999_v10 }
  0xdc   : > { %812 = vmatpush3.bf16.msra.mxu0 %v999_v10  ;;  %844 = vmatpush3.bf16.msra.mxu1 %v999_v10 }
  0xdf   : > { %814 = vmatmul.mubr.bf16.vlgmr.msra.gmra.mxu0 %v1002_v11  ;;  %822 = vmatmul.mubr.bf16.vlgmr.msra.gmra.mxu1 %v1003_v12 }
  0xe0   : > { %817 = vmatprep.mubr.bf16.mxu0 %v1004_v13  ;;  %825 = vmatprep.mubr.bf16.mxu1 %v1005_v14 }
  0xe7   : > { %818 = vmatmul.mubr.bf16.gmra.mxu0 %v1006_v15  ;;  %826 = vmatmul.mubr.bf16.gmra.mxu1 %v1007_v16 }
 0x19f   : > { %v815_v19 = vpop.f32.mrf.mxu0  ;;  %v823_v20 = vpop.f32.mrf.mxu1 }
 0x1a0   : > { %v536_v23 = vadd.f32 %v815_v19, %v295_v17  ;;  %v544_v24 = vadd.f32 %v823_v20, %v303_v18 }
 0x1a1   : > { %v471_v25 = vpop.f32.mrf.mxu0  ;;  %v503_v26 = vpop.f32.mrf.mxu1 }
 0x1a2   : > { %552 = vst [vmem:[#allocation2 + $0x58] sm:$0xff] %v536_v23  ;;  %560 = vst [vmem:[#allocation2 + $0x10] sm:$0xff] %v544_v24  ;;  %v534_v29 = vadd.f32 %v471_v25, %v293_v21  ;;  %v542_v30 = vadd.f32 %v503_v26, %v301_v22 }
 0x1a3   : > { %v816_v31 = vpop.f32.mrf.mxu0  ;;  %v824_v32 = vpop.f32.mrf.mxu1 }
 0x1a4   : > { %550 = vst [vmem:[#allocation2 + $0x30] sm:$0xff] %v534_v29  ;;  %558 = vst [vmem:[#allocation2 + $0x40] sm:$0xff] %v542_v30  ;;  %v537_v35 = vadd.f32 %v816_v31, %v296_v27  ;;  %v545_v36 = vadd.f32 %v824_v32, %v304_v28 }
 0x1a5   : > { %v474_v37 = vpop.f32.mrf.mxu0  ;;  %v506_v38 = vpop.f32.mrf.mxu1 }
 0x1a6   : > { %553 = vst [vmem:[#allocation2 + $0x18] sm:$0xff] %v537_v35  ;;  %561 = vst [vmem:[#allocation2 + $0x38] sm:$0xff] %v545_v36  ;;  %v535_v41 = vadd.f32 %v474_v37, %v294_v33  ;;  %v543_v42 = vadd.f32 %v506_v38, %v302_v34 }
 0x1a7   : > { %v819_v43 = vpop.f32.mrf.mxu0  ;;  %v827_v44 = vpop.f32.mrf.mxu1 }
 0x1a8   : > { %551 = vst [vmem:[#allocation2] sm:$0xff] %v535_v41  ;;  %559 = vst [vmem:[#allocation2 + $0x20] sm:$0xff] %v543_v42  ;;  %v540_v47 = vadd.f32 %v819_v43, %v299_v39  ;;  %v548_v48 = vadd.f32 %v827_v44, %v307_v40 }
 0x1a9   : > { %v487_v49 = vpop.f32.mrf.mxu0  ;;  %v519_v50 = vpop.f32.mrf.mxu1 }
 0x1aa   : > { %556 = vst [vmem:[#allocation2 + $0x8] sm:$0xff] %v540_v47  ;;  %564 = vst [vmem:[#allocation2 + $0x78] sm:$0xff] %v548_v48  ;;  %v538_v53 = vadd.f32 %v487_v49, %v297_v45  ;;  %v546_v54 = vadd.f32 %v519_v50, %v305_v46 }
 0x1ab   : > { %v820_v55 = vpop.f32.mrf.mxu0  ;;  %v828_v56 = vpop.f32.mrf.mxu1 }
 0x1ac   : > { %554 = vst [vmem:[#allocation2 + $0x50] sm:$0xff] %v538_v53  ;;  %562 = vst [vmem:[#allocation2 + $0x60] sm:$0xff] %v546_v54  ;;  %v541_v59 = vadd.f32 %v820_v55, %v300_v51  ;;  %v549_v60 = vadd.f32 %v828_v56, %v308_v52 }
 0x1ad   : > { %v490_v61 = vpop.f32.mrf.mxu0  ;;  %v522_v62 = vpop.f32.mrf.mxu1 }
 0x1ae   : > { %557 = vst [vmem:[#allocation2 + $0x48] sm:$0xff] %v541_v59  ;;  %565 = vst [vmem:[#allocation2 + $0x28] sm:$0xff] %v549_v60  ;;  %v539_v63 = vadd.f32 %v490_v61, %v298_v57  ;;  %v547_v0 = vadd.f32 %v522_v62, %v306_v58 }
 0x1b0   : > { %555 = vst [vmem:[#allocation2 + $0x68] sm:$0xff] %v539_v63  ;;  %563 = vst [vmem:[#allocation2 + $0x70] sm:$0xff] %v547_v0 }
 0x1b1 PF: > { %s1725_s10 = sld [smem:[#allocation20_spill]] }
 0x1b7   : > { %p772_p13 = scmp.ne.s32.totalorder %s1725_s10, 1 }
 0x1b9   : > { %569 = sbr.rel (%p772_p13) target bundleno = 455 (0x1c7), region = 48 }
 0x1be   : > { %v570_v1 = vld [vmem:[#allocation2 + $0x30] sm:$0xff]  ;;  %v571_v2 = vld [vmem:[#allocation2] sm:$0xff]  ;;  %v572_v3 = vld [vmem:[#allocation2 + $0x58] sm:$0xff] }
 0x1bf   : > { %586 = vst [vmem:[%s1553_s15] sm:$0xff] %v570_v1  ;;  %587 = vst [vmem:[%s1553_s15 + $0x8] sm:$0xff] %v571_v2  ;;  %v573_v4 = vld [vmem:[#allocation2 + $0x18] sm:$0xff]  ;;  %v574_v5 = vld [vmem:[#allocation2 + $0x50] sm:$0xff] }
 0x1c0   : > { %588 = vst [vmem:[%s1553_s15 + $0x10] sm:$0xff] %v572_v3  ;;  %v575_v6 = vld [vmem:[#allocation2 + $0x68] sm:$0xff]  ;;  %589 = vst [vmem:[%s1553_s15 + $0x18] sm:$0xff] %v573_v4  ;;  %v578_v9 = vld [vmem:[#allocation2 + $0x40] sm:$0xff] }
 0x1c1   : > { %590 = vst [vmem:[%s1553_s15 + $0x20] sm:$0xff] %v574_v5  ;;  %591 = vst [vmem:[%s1553_s15 + $0x28] sm:$0xff] %v575_v6  ;;  %v576_v7 = vld [vmem:[#allocation2 + $0x8] sm:$0xff]  ;;  %v579_v10 = vld [vmem:[#allocation2 + $0x20] sm:$0xff] }
 0x1c2   : > { %v577_v8 = vld [vmem:[#allocation2 + $0x48] sm:$0xff]  ;;  %592 = vst [vmem:[%s1553_s15 + $0x30] sm:$0xff] %v576_v7  ;;  %594 = vst [vmem:[%s1553_s15 + $0x40] sm:$0xff] %v578_v9  ;;  %v580_v11 = vld [vmem:[#allocation2 + $0x10] sm:$0xff] }
 0x1c3   : > { %593 = vst [vmem:[%s1553_s15 + $0x38] sm:$0xff] %v577_v8  ;;  %v581_v12 = vld [vmem:[#allocation2 + $0x38] sm:$0xff]  ;;  %595 = vst [vmem:[%s1553_s15 + $0x48] sm:$0xff] %v579_v10  ;;  %v582_v13 = vld [vmem:[#allocation2 + $0x60] sm:$0xff] }
 0x1c4   : > { %596 = vst [vmem:[%s1553_s15 + $0x50] sm:$0xff] %v580_v11  ;;  %597 = vst [vmem:[%s1553_s15 + $0x58] sm:$0xff] %v581_v12  ;;  %v583_v14 = vld [vmem:[#allocation2 + $0x70] sm:$0xff]  ;;  %v584_v15 = vld [vmem:[#allocation2 + $0x78] sm:$0xff] }
 0x1c5   : > { %598 = vst [vmem:[%s1553_s15 + $0x60] sm:$0xff] %v582_v13  ;;  %599 = vst [vmem:[%s1553_s15 + $0x68] sm:$0xff] %v583_v14  ;;  %v585_v16 = vld [vmem:[#allocation2 + $0x28] sm:$0xff] }
 0x1c6   : > { %600 = vst [vmem:[%s1553_s15 + $0x70] sm:$0xff] %v584_v15  ;;  %601 = vst [vmem:[%s1553_s15 + $0x78] sm:$0xff] %v585_v16 }
 0x1c7 PF: > { %s1726_s12 = sld [smem:[#allocation21_spill]]  ;;  %s617_s18 = sshll.u32 %s1553_s15, 4  ;;  %s1598_s18 = int_to_ptr.vmem [resolvable:$true] %s617_s18 }
 0x1c8   : > { %s1727_s30 = sld [smem:[#allocation27_spill]]  ;;  %s1602_s11 = scalar_lea.sflag [#allocation8], %s255_s13 }
 0x1c9   : > { %s1084_s4 = scalar_lea.vmem %s1598_s18, 2048  ;;  %p1729_p4 = scmp.ne.s32.totalorder %s1711_s24, 0 }
 0x1ca   : > { %p1085_p1 = scmp.ne.s32.totalorder %s1598_s18, %s1084_s4  ;;  %s1244_s6 = smov [#allocation11]  }
 0x1cb   : > { %s1088_s27 = sshll.u32 %s1244_s6, 4  ;;  %s1089_s27 = int_to_ptr.vmem [resolvable:$false] %s1088_s27 }
 0x1cc   : > { %p1086_p6 = pnand %p1085_p1, %p1729_p4  ;;  %s1090_s22 = scalar_lea.vmem %s1089_s27, 4096 }
 0x1cd   : > { %s780_s9 = sshll.u32 %s1726_s12, 11  ;;  %p1091_p5 = scmp.lt.s32.totalorder %s1598_s18, %s1089_s27 }
 0x1ce   : > { %s1728_s14 = smov %s1727_s30  ;;  %s1595_s17 = scalar_lea.hbm %s1727_s30, %s780_s9 }
 0x1cf   : > { %p1087_p8 = pneg %p1086_p6  ;;  %p1092_p7 = scmp.lt.s32.totalorder %s1090_s22, %s1084_s4 }
 0x1d1   : > { %p1093_p10 = por %p1092_p7, %p1091_p5 }
 0x1d3   : > { %p1094_p11 = pnand %p1093_p10, %p1087_p8 }
 0x1d5   : > { %1097 = shalt.err (!%p1094_p11)
}
 0x1d6   : > { %s1098_s13 = scalar_lea.hbm %s1595_s17, 2048  ;;  %s1102_s10 = scalar_lea.hbm %s1728_s14, 4096 }
 0x1d7   : > { %p1099_p9 = scmp.ne.s32.totalorder %s1595_s17, %s1098_s13  ;;  %p1103_p2 = scmp.lt.s32.totalorder %s1595_s17, %s1728_s14 }
 0x1d8   : > { %p1104_p3 = scmp.lt.s32.totalorder %s1102_s10, %s1098_s13 }
 0x1d9   : > { %p1100_p12 = pnand %p1099_p9, %p1729_p4 }
 0x1da   : > { %p1105_p13 = por %p1104_p3, %p1103_p2 }
 0x1db   : > { %p1101_p0 = pneg %p1100_p12 }
 0x1dd   : > { %p1106_p1 = pnand %p1105_p13, %p1101_p0 }
 0x1df   : > { %1109 = shalt.err (!%p1106_p1)
}
 0x1e0   : > { %s1245_s5 = smov 128   ;;  %s1246_s20 = smov 8  }
 0x1e1   : > { %853 = dma.vmem_to_hbm [thread:$0]  (%p1729_p4), %s1598_s18, 2048, %s1595_s17, %s1602_s11, %s1245_s5, %s1245_s5, %s1246_s20  }
 0x1e2 PF: > { %p871_p6 = scmp.ge.s32.totalorder %s1234_s8, 2  ;;  %s632_s30 = sand.u32 1, %s1182_s0  }
 0x1e3   : > { %p1730_p8 = scmp.ne.s32.totalorder %s1712_s16, 0  ;;  %s633_s4 = scalar_lea.sflag [#allocation8], %s632_s30 }
 0x1e5   : > { %p867_p5 = pnand %p871_p6, %p1730_p8 }
 0x1e7   : > { %p868_p7 = pneg %p867_p5 }
 0x1e9   : > { %1177 = dma.done.wait (%p868_p7), %s633_s4, 2048  }
 0x1ea   : > { %1179 = vsyncadd (%p868_p7), %s633_s4, 4294965248  ;;  %s31_s8 = sadd.s32 1, %s1234_s8   ;;  %s1732_s24 = sld [smem:[#allocation26_spill]] }
 0x1eb   : > { %p1630_p10 = scmp.ge.s32.totalorder %s31_s8, 6   ;;  %s1733_s30 = sld [smem:[#allocation22_spill]] }
 0x1ec   : > { %s1734_s5 = sld [smem:[#allocation23_spill]]  ;;  %s1738_s0 = smov %s1186_s1 }
 0x1ed   : > { %s1735_s16 = sld [smem:[#allocation24_spill]]  ;;  %s1739_s1 = smov %s1190_s23 }
 0x1ee   : > { %s1736_s17 = sld [smem:[#allocation25_spill]]  ;;  %s1744_s27 = smov %s1210_s28 }
 0x1ef   : > { %s1745_s28 = smov %s1214_s29  ;;  %s1746_s29 = smov %s1404_s21 }
 0x1f0   : > { %s1740_s23 = smov %s1732_s24  ;;  %s1741_s24 = smov %s1198_s25 }
 0x1f1   : > { %s1742_s25 = smov %s1202_s26  ;;  %s1743_s26 = smov %s1484_s7 }
 0x1f2   :  { %30 = sbr.rel (!%p1630_p10) target bundleno = 28 (0x1c), region = 98 }
 0x1f3   : > { %s1747_s6 = smov %s1735_s16 }
 0x1f4   : > { %s1748_s7 = smov %s1736_s17 }
 0x1f7   :  { %638 = vsyncpa [#allocation7], 1 }
 0x1f8   :  { %640 = vsyncpa [#allocation7 + $0x1], 1 }
 0x1f9   :  { %641 = vsyncpa [#allocation10], 1 }
 0x1fa   :  { %643 = vsyncpa [#allocation10 + $0x1], 1 }
 0x1fb   :  { %644 = vsyncpa [#allocation8], 1 }
 0x1fc   :  { %646 = vsyncpa [#allocation8 + $0x1], 1 }

</bundles_post_ra>
